<compile_context>
chip_gen: v7x
topology: tpu7x:2x2x1
jax: 0.10.0
libtpu: 0.0.40
codegen_flags: <defaults>
</compile_context>

<pallas_src>
import functools

import jax
import jax.numpy as jnp
from jax.experimental import pallas as pl
from jax.experimental.pallas import tpu as pltpu


# ---------------------------------------------------------------------------
# Shared in-kernel math
# ---------------------------------------------------------------------------
def _se_combine(x, sq, w1, b1, w2, b2, cw, cb0):
    """x: (C, T) f32 tile; sq: (C, 1) f32 spatial mean for this batch.

    Returns max(x * cse_gate, x * sse_gate) in f32 (direct form, identical to
    the reference torch.max(cSE(x), sSE(x)) and 3 VALU ops/elem).
    """
    # cSE excitation: FC1 -> ReLU -> FC2 -> sigmoid (tiny, O(C*Cr) flops).
    h = jnp.maximum(
        jnp.dot(w1, sq, preferred_element_type=jnp.float32) + b1, 0.0)     # (Cr, 1)
    gc = jax.nn.sigmoid(
        jnp.dot(w2, h, preferred_element_type=jnp.float32) + b2)           # (C, 1)

    # sSE squeeze: 1x1 conv == per-pixel channel contraction.
    c = x.shape[0]
    if c >= 128:
        # Large C: put the contraction on the (otherwise idle) MXU.
        conv = jax.lax.dot_general(cw, x, (((0,), (0,)), ((), ())),
                                   preferred_element_type=jnp.float32)     # (1, T)
    else:
        conv = jnp.sum(x * cw, axis=0, keepdims=True)                      # (1, T)
    gs = jax.nn.sigmoid(conv + cb0)                                        # (1, T)

    return jnp.maximum(x * gc, x * gs)


# ---------------------------------------------------------------------------
# Kernels
# ---------------------------------------------------------------------------
def _fused_kernel(x_ref, w1_ref, b1_ref, w2_ref, b2_ref, cw_ref, cb_ref, o_ref,
                  *, inv_hw):
    """Single-pass per-batch kernel: squeeze + MLP + sSE + combine."""
    x = x_ref[0].astype(jnp.float32)                                       # (C, HW)
    sq = jnp.sum(x, axis=-1, keepdims=True) * inv_hw                       # (C, 1)
    out = _se_combine(x, sq, w1_ref[...], b1_ref[...], w2_ref[...],
                      b2_ref[...], cw_ref[...], cb_ref[0, 0])
    o_ref[0] = out.astype(o_ref.dtype)


def _sum_kernel(x_ref, sum_ref, *, hw, tile):
    """Pass 1 (fallback): accumulate per-(b, c) spatial sums across HW tiles."""
    @pl.when(pl.program_id(1) == 0)
    def _():
        sum_ref[...] = jnp.zeros_like(sum_ref)

    x = x_ref[...].astype(jnp.float32)                                     # (1, C, t)
    if hw % tile != 0:
        # Ragged tail: out-of-range lanes of the edge block are undefined --
        # mask them out of the reduction (no host-side padding).
        start = pl.program_id(1) * tile
        lane = jax.lax.broadcasted_iota(jnp.int32, x.shape, 2) + start
        x = jnp.where(lane < hw, x, 0.0)
    sum_ref[...] += jnp.sum(x, axis=-1, keepdims=True)


def _stream_kernel(x_ref, sums_ref, w1_ref, b1_ref, w2_ref, b2_ref, cw_ref,
                   cb_ref, o_ref, *, inv_hw):
    """Pass 2 (fallback): in-kernel cSE gate + sSE conv + fused combine."""
    x = x_ref[0].astype(jnp.float32)                                       # (C, t)
    sq = sums_ref[0] * inv_hw                                              # (C, 1)
    out = _se_combine(x, sq, w1_ref[...], b1_ref[...], w2_ref[...],
                      b2_ref[...], cw_ref[...], cb_ref[0, 0])
    # Out-of-bounds lanes of the edge block are clipped by the pipeline
    # writeback, so no store mask is needed (all math above is lane-local
    # except the channel reduction, which stays within a lane).
    o_ref[0] = out.astype(o_ref.dtype)


# ---------------------------------------------------------------------------
# Wrapper helpers
# ---------------------------------------------------------------------------
def _vmem_limit(nbytes):
    # Generous cap, but stays under v7x's 64 MiB physical VMEM.
    return int(min(max(nbytes, 32 << 20), 48 << 20))


def _choose_tile(hw, c, itemsize, target_bytes):
    """Spatial tile sized by bytes (~1-2 MiB blocks), 128-lane aligned."""
    t = (int(target_bytes) // max(1, itemsize * c)) // 128 * 128
    t = max(t, 128)
    return hw if t >= hw else t   # full-extent block is exempt from 128 rule


# ---------------------------------------------------------------------------
# Forward
# ---------------------------------------------------------------------------
def channel_spatial_se(x, params, *, fused_vmem_budget=40 << 20,
                       tile_target_bytes=2 << 20):
    """x: (B, C, H, W), same layout/semantics as the PyTorch module."""
    B, C, H, W = x.shape
    HW = H * W
    dtype = x.dtype
    itemsize = jnp.dtype(dtype).itemsize
    Cr = params["w1"].shape[0]
    inv_hw = 1.0 / HW

    x3 = x.reshape(B, C, HW)

    w1 = params["w1"].astype(jnp.float32)                    # (Cr, C)
    b1 = params["b1"].astype(jnp.float32).reshape(Cr, 1)     # (Cr, 1)
    w2 = params["w2"].astype(jnp.float32)                    # (C, Cr)
    b2 = params["b2"].astype(jnp.float32).reshape(C, 1)      # (C, 1)
    cw = params["cw"].astype(jnp.float32).reshape(C, 1)      # (C, 1)
    cb = params["cb"].astype(jnp.float32).reshape(1, 1)      # (1, 1) -> SMEM

    # ---------- fused single-pass path (1 HBM read + 1 HBM write of x) -----
    slab = C * HW * itemsize
    # 2x(in) + 2x(out) pipeline buffers + ~3 f32-slab in-kernel temporaries.
    fused_need = 4 * slab + 3 * C * HW * 4 + (1 << 20)
    if fused_need <= fused_vmem_budget:
        out = pl.pallas_call(
            functools.partial(_fused_kernel, inv_hw=inv_hw),
            out_shape=jax.ShapeDtypeStruct((B, C, HW), dtype),
            grid=(B,),
            in_specs=[
                pl.BlockSpec((1, C, HW), lambda b: (b, 0, 0)),       # x slab
                pl.BlockSpec((Cr, C), lambda b: (0, 0)),             # fc1 W
                pl.BlockSpec((Cr, 1), lambda b: (0, 0)),             # fc1 b
                pl.BlockSpec((C, Cr), lambda b: (0, 0)),             # fc2 W
                pl.BlockSpec((C, 1), lambda b: (0, 0)),              # fc2 b
                pl.BlockSpec((C, 1), lambda b: (0, 0)),              # conv W
                pl.BlockSpec(memory_space=pltpu.MemorySpace.SMEM),   # conv b
            ],
            out_specs=pl.BlockSpec((1, C, HW), lambda b: (b, 0, 0)),
            compiler_params=pltpu.CompilerParams(
                dimension_semantics=("parallel",),
                vmem_limit_bytes=_vmem_limit(fused_need)),
        )(x3, w1, b1, w2, b2, cw, cb)
        return out.reshape(B, C, H, W)

    # ---------- fallback: two-pass tiled/pipelined path ---------------------
    t = _choose_tile(HW, C, itemsize, tile_target_bytes)
    n_s = pl.cdiv(HW, t)
    blk = C * t * itemsize

    # pass 1: streaming spatial-sum reduction (ragged tail masked in-kernel)
    sums = pl.pallas_call(
        functools.partial(_sum_kernel, hw=HW, tile=t),
        out_shape=jax.ShapeDtypeStruct((B, C, 1), jnp.float32),
        grid=(B, n_s),
        in_specs=[pl.BlockSpec((1, C, t), lambda b, s: (b, 0, s))],
        out_specs=pl.BlockSpec((1, C, 1), lambda b, s: (b, 0, 0)),
        compiler_params=pltpu.CompilerParams(
            dimension_semantics=("parallel", "arbitrary"),
            vmem_limit_bytes=_vmem_limit(4 * blk + (4 << 20))),
    )(x3)

    # pass 2: in-kernel cSE gate (from sums) + sSE conv + fused combine
    out = pl.pallas_call(
        functools.partial(_stream_kernel, inv_hw=inv_hw),
        out_shape=jax.ShapeDtypeStruct((B, C, HW), dtype),
        grid=(B, n_s),
        in_specs=[
            pl.BlockSpec((1, C, t), lambda b, s: (b, 0, s)),         # x tile
            pl.BlockSpec((1, C, 1), lambda b, s: (b, 0, 0)),         # sums
            pl.BlockSpec((Cr, C), lambda b, s: (0, 0)),              # fc1 W
            pl.BlockSpec((Cr, 1), lambda b, s: (0, 0)),              # fc1 b
            pl.BlockSpec((C, Cr), lambda b, s: (0, 0)),              # fc2 W
            pl.BlockSpec((C, 1), lambda b, s: (0, 0)),               # fc2 b
            pl.BlockSpec((C, 1), lambda b, s: (0, 0)),               # conv W
            pl.BlockSpec(memory_space=pltpu.MemorySpace.SMEM),       # conv b
        ],
        out_specs=pl.BlockSpec((1, C, t), lambda b, s: (b, 0, s)),
        compiler_params=pltpu.CompilerParams(
            dimension_semantics=("parallel", "parallel"),
            vmem_limit_bytes=_vmem_limit(7 * blk + (4 << 20))),
    )(x3, sums, w1, b1, w2, b2, cw, cb)
    return out.reshape(B, C, H, W)


# ---------------------------------------------------------------------------
# Params / reference
# ---------------------------------------------------------------------------
def init_params(key, num_channels, reduction_ratio=2):
    """Deterministic synthetic params matching the PyTorch module's shapes."""
    c = num_channels
    cr = num_channels // reduction_ratio
    k1, k2, k3, k4, k5, k6 = jax.random.split(key, 6)
    return {
        # fc1: Linear(C -> Cr): weight (Cr, C), bias (Cr,)
        "w1": jax.random.normal(k1, (cr, c), jnp.float32) * 0.5,
        "b1": jax.random.normal(k2, (cr,), jnp.float32) * 0.1,
        # fc2: Linear(Cr -> C): weight (C, Cr), bias (C,)
        "w2": jax.random.normal(k3, (c, cr), jnp.float32) * 0.5,
        "b2": jax.random.normal(k4, (c,), jnp.float32) * 0.1,
        # sSE conv: Conv2d(C, 1, kernel_size=1): weight (C,), bias ()
        "cw": jax.random.normal(k5, (c,), jnp.float32) * 0.5,
        "cb": jax.random.normal(k6, (), jnp.float32) * 0.1,
    }


def ref_forward(x, p):
    """Pure-JAX reference mirroring the PyTorch forward."""
    B, C, H, W = x.shape
    sq = x.reshape(B, C, -1).mean(-1)                                  # (B, C)
    h = jnp.maximum(sq @ p["w1"].T + p["b1"], 0.0)
    gc = jax.nn.sigmoid(h @ p["w2"].T + p["b2"])                       # (B, C)
    cse = x * gc[:, :, None, None]
    conv = jnp.einsum("bchw,c->bhw", x, p["cw"]) + p["cb"]
    sse = x * jax.nn.sigmoid(conv)[:, None, :, :]
    return jnp.maximum(cse, sse)


# ---------------------------------------------------------------------------
# Test
# ---------------------------------------------------------------------------
if __name__ == "__main__":
    key = jax.random.PRNGKey(0)

    cases = [
        # fused single-pass path
        dict(shape=(2, 4, 16, 16)),
        dict(shape=(1, 4, 32, 32)),
        dict(shape=(2, 8, 14, 14)),                 # HW=196, not 128-aligned
        # forced two-pass path (exercise the big-slab fallback on small data)
        dict(shape=(2, 4, 16, 16), fused_vmem_budget=0),                       # single full-extent tile
        dict(shape=(2, 8, 14, 14), fused_vmem_budget=0, tile_target_bytes=1),  # ragged masked tail
    ]

    for case in cases:
        B, C, H, W = case["shape"]
        key, kx, kp = jax.random.split(key, 3)
        x = jax.random.normal(kx, (B, C, H, W), jnp.float32)
        params = init_params(kp, C, reduction_ratio=2)

        fwd = jax.jit(functools.partial(
            channel_spatial_se,
            fused_vmem_budget=case.get("fused_vmem_budget", 40 << 20),
            tile_target_bytes=case.get("tile_target_bytes", 2 << 20)))

        out = jax.block_until_ready(fwd(x, params))
        ref = ref_forward(x, params)

        assert out.shape == (B, C, H, W)
        assert jnp.allclose(out, ref, atol=1e-5, rtol=1e-5), \
            f"mismatch vs reference for case {case}"

    print("KERNEL_OK")
</pallas_src>

<mosaic_0001>
module attributes {stable_mosaic.version = 11 : i64} {
  func.func @_fused_kernel(%arg0: i32, %arg1: memref<1x4x256xf32, #tpu.memory_space<vmem>>, %arg2: memref<2x4xf32, #tpu.memory_space<vmem>>, %arg3: memref<2x1xf32, #tpu.memory_space<vmem>>, %arg4: memref<4x2xf32, #tpu.memory_space<vmem>>, %arg5: memref<4x1xf32, #tpu.memory_space<vmem>>, %arg6: memref<4x1xf32, #tpu.memory_space<vmem>>, %arg7: memref<1x1xf32, #tpu.memory_space<smem>>, %arg8: memref<1x4x256xf32, #tpu.memory_space<vmem>>) attributes {dimension_semantics = [#tpu.dimension_semantics<parallel>], iteration_bounds = array<i64: 2>, scalar_prefetch = 0 : i64, scratch_operands = 0 : i64, tpu.core_type = #tpu.core_type<tc>, window_params = [{transform_indices = @transform_0, window_bounds = array<i64: 1, 4, 256>}, {pipeline_mode = #tpu.pipeline_mode<synchronous>, transform_indices = @transform_1, window_bounds = array<i64: 2, 4>}, {pipeline_mode = #tpu.pipeline_mode<synchronous>, transform_indices = @transform_2, window_bounds = array<i64: 2, 1>}, {pipeline_mode = #tpu.pipeline_mode<synchronous>, transform_indices = @transform_3, window_bounds = array<i64: 4, 2>}, {pipeline_mode = #tpu.pipeline_mode<synchronous>, transform_indices = @transform_4, window_bounds = array<i64: 4, 1>}, {pipeline_mode = #tpu.pipeline_mode<synchronous>, transform_indices = @transform_5, window_bounds = array<i64: 4, 1>}, {transform_indices = @transform_6, window_bounds = array<i64: 1, 1>}, {transform_indices = @transform_7, window_bounds = array<i64: 1, 4, 256>}]} {
    %c0 = arith.constant 0 : index
    %c0_0 = arith.constant 0 : index
    %c0_1 = arith.constant 0 : index
    %0 = vector.load %arg1[%c0, %c0_0, %c0_1] : memref<1x4x256xf32, #tpu.memory_space<vmem>>, vector<1x4x256xf32>
    %1 = vector.shape_cast %0 : vector<1x4x256xf32> to vector<4x256xf32>
    %cst = arith.constant dense<0.000000e+00> : vector<4xf32>
    %2 = vector.multi_reduction <add>, %1, %cst [1] : vector<4x256xf32> to vector<4xf32>
    %3 = vector.shape_cast %2 : vector<4xf32> to vector<4x1xf32>
    %cst_2 = arith.constant 3.906250e-03 : f32
    %4 = vector.broadcast %cst_2 : f32 to vector<4x1xf32>
    %5 = arith.mulf %3, %4 : vector<4x1xf32>
    %c0_3 = arith.constant 0 : index
    %c0_4 = arith.constant 0 : index
    %6 = vector.load %arg2[%c0_3, %c0_4] : memref<2x4xf32, #tpu.memory_space<vmem>>, vector<2x4xf32>
    %c0_5 = arith.constant 0 : index
    %c0_6 = arith.constant 0 : index
    %7 = vector.load %arg3[%c0_5, %c0_6] : memref<2x1xf32, #tpu.memory_space<vmem>>, vector<2x1xf32>
    %c0_7 = arith.constant 0 : index
    %c0_8 = arith.constant 0 : index
    %8 = vector.load %arg4[%c0_7, %c0_8] : memref<4x2xf32, #tpu.memory_space<vmem>>, vector<4x2xf32>
    %c0_9 = arith.constant 0 : index
    %c0_10 = arith.constant 0 : index
    %9 = vector.load %arg5[%c0_9, %c0_10] : memref<4x1xf32, #tpu.memory_space<vmem>>, vector<4x1xf32>
    %c0_11 = arith.constant 0 : index
    %c0_12 = arith.constant 0 : index
    %10 = vector.load %arg6[%c0_11, %c0_12] : memref<4x1xf32, #tpu.memory_space<vmem>>, vector<4x1xf32>
    %c0_13 = arith.constant 0 : index
    %c0_14 = arith.constant 0 : index
    %11 = memref.load %arg7[%c0_13, %c0_14] : memref<1x1xf32, #tpu.memory_space<smem>>
    %cst_15 = arith.constant dense<0.000000e+00> : vector<2x1xf32>
    %12 = tpu.matmul %6, %5, %cst_15 {dimension_numbers = #tpu.dot_dimension_numbers<[1], [0], [0], [1], [0, 0, 1, 1], [], []>} : vector<2x4xf32>, vector<4x1xf32>, vector<2x1xf32> -> vector<2x1xf32>
    %13 = arith.addf %12, %7 : vector<2x1xf32>
    %cst_16 = arith.constant 0.000000e+00 : f32
    %14 = vector.broadcast %cst_16 : f32 to vector<2x1xf32>
    %15 = arith.maximumf %13, %14 : vector<2x1xf32>
    %cst_17 = arith.constant dense<0.000000e+00> : vector<4x1xf32>
    %16 = tpu.matmul %8, %15, %cst_17 {dimension_numbers = #tpu.dot_dimension_numbers<[1], [0], [0], [1], [0, 0, 1, 1], [], []>} : vector<4x2xf32>, vector<2x1xf32>, vector<4x1xf32> -> vector<4x1xf32>
    %17 = arith.addf %16, %9 : vector<4x1xf32>
    %18 = arith.negf %17 : vector<4x1xf32>
    %19 = math.exp %18 : vector<4x1xf32>
    %cst_18 = arith.constant 1.000000e+00 : f32
    %20 = vector.broadcast %cst_18 : f32 to vector<4x1xf32>
    %21 = arith.addf %20, %19 : vector<4x1xf32>
    %22 = arith.divf %20, %21 : vector<4x1xf32>
    %23 = vector.broadcast %10 : vector<4x1xf32> to vector<4x256xf32>
    %24 = arith.mulf %1, %23 : vector<4x256xf32>
    %cst_19 = arith.constant dense<0.000000e+00> : vector<256xf32>
    %25 = vector.multi_reduction <add>, %24, %cst_19 [0] : vector<4x256xf32> to vector<256xf32>
    %26 = vector.shape_cast %25 : vector<256xf32> to vector<1x256xf32>
    %27 = vector.broadcast %11 : f32 to vector<1x256xf32>
    %28 = arith.addf %26, %27 : vector<1x256xf32>
    %29 = arith.negf %28 : vector<1x256xf32>
    %30 = math.exp %29 : vector<1x256xf32>
    %cst_20 = arith.constant 1.000000e+00 : f32
    %31 = vector.broadcast %cst_20 : f32 to vector<1x256xf32>
    %32 = arith.addf %31, %30 : vector<1x256xf32>
    %33 = arith.divf %31, %32 : vector<1x256xf32>
    %34 = vector.broadcast %22 : vector<4x1xf32> to vector<4x256xf32>
    %35 = arith.mulf %1, %34 : vector<4x256xf32>
    %36 = vector.broadcast %33 : vector<1x256xf32> to vector<4x256xf32>
    %37 = arith.mulf %1, %36 : vector<4x256xf32>
    %38 = arith.maximumf %35, %37 : vector<4x256xf32>
    %c0_21 = arith.constant 0 : index
    %c0_22 = arith.constant 0 : index
    %c0_23 = arith.constant 0 : index
    %39 = vector.load %arg8[%c0_21, %c0_22, %c0_23] : memref<1x4x256xf32, #tpu.memory_space<vmem>>, vector<1x4x256xf32>
    %40 = vector.shape_cast %39 : vector<1x4x256xf32> to vector<4x256xf32>
    %41 = vector.shape_cast %38 : vector<4x256xf32> to vector<1x4x256xf32>
    tpu.vector_store %arg8[%c0_21, %c0_22, %c0_23], %41 {strides = array<i32>} : memref<1x4x256xf32, #tpu.memory_space<vmem>>, vector<1x4x256xf32>,
    return
  }
  func.func @transform_0(%arg0: i32) -> (i32, i32, i32) {
    %c0_i32 = arith.constant 0 : i32
    %c0_i32_0 = arith.constant 0 : i32
    %c0_i32_1 = arith.constant 0 : i32
    return %arg0, %c0_i32, %c0_i32_0 : i32, i32, i32
  }
  func.func @transform_1(%arg0: i32) -> (i32, i32) {
    %c0_i32 = arith.constant 0 : i32
    %c0_i32_0 = arith.constant 0 : i32
    %c0_i32_1 = arith.constant 0 : i32
    return %c0_i32, %c0_i32_0 : i32, i32
  }
  func.func @transform_2(%arg0: i32) -> (i32, i32) {
    %c0_i32 = arith.constant 0 : i32
    %c0_i32_0 = arith.constant 0 : i32
    %c0_i32_1 = arith.constant 0 : i32
    return %c0_i32, %c0_i32_0 : i32, i32
  }
  func.func @transform_3(%arg0: i32) -> (i32, i32) {
    %c0_i32 = arith.constant 0 : i32
    %c0_i32_0 = arith.constant 0 : i32
    %c0_i32_1 = arith.constant 0 : i32
    return %c0_i32, %c0_i32_0 : i32, i32
  }
  func.func @transform_4(%arg0: i32) -> (i32, i32) {
    %c0_i32 = arith.constant 0 : i32
    %c0_i32_0 = arith.constant 0 : i32
    %c0_i32_1 = arith.constant 0 : i32
    return %c0_i32, %c0_i32_0 : i32, i32
  }
  func.func @transform_5(%arg0: i32) -> (i32, i32) {
    %c0_i32 = arith.constant 0 : i32
    %c0_i32_0 = arith.constant 0 : i32
    %c0_i32_1 = arith.constant 0 : i32
    return %c0_i32, %c0_i32_0 : i32, i32
  }
  func.func @transform_6(%arg0: i32) -> (i32, i32) {
    %c0_i32 = arith.constant 0 : i32
    %c0_i32_0 = arith.constant 0 : i32
    %c0_i32_1 = arith.constant 0 : i32
    return %c0_i32, %c0_i32_0 : i32, i32
  }
  func.func @transform_7(%arg0: i32) -> (i32, i32, i32) {
    %c0_i32 = arith.constant 0 : i32
    %c0_i32_0 = arith.constant 0 : i32
    %c0_i32_1 = arith.constant 0 : i32
    return %arg0, %c0_i32, %c0_i32_0 : i32, i32, i32
  }
}

</mosaic_0001>

<bundles_post_ra>
// kernel: channel_spatial_se.1
= control target key start
LH: loop header
LB: loop body
LE: loop exit
PB: predicated region body
PF: predicated region fallthrough
CT: control target
= control target key end

     0   :  { %s695_s26 = smov 0   ;;  %s747_s0 = inlined_call_operand.vmem [shape: f32[2,4,256], index: 0, kind: input, shape index: {}]   ;;  %s748_s1 = inlined_call_operand.vmem [shape: f32[2,4], index: 1, kind: input, shape index: {}]   ;;  %s749_s2 = inlined_call_operand.vmem [shape: f32[2,1], index: 2, kind: input, shape index: {}]   ;;  %s750_s3 = inlined_call_operand.vmem [shape: f32[4,2], index: 3, kind: input, shape index: {}]   ;;  %s751_s4 = inlined_call_operand.vmem [shape: f32[4,1], index: 4, kind: input, shape index: {}]   ;;  %s752_s5 = inlined_call_operand.vmem [shape: f32[4,1], index: 5, kind: input, shape index: {}]   ;;  %s753_s6 = inlined_call_operand.<no memory space> [shape: f32[1,1], index: 6, kind: input, shape index: {}]   ;;  %s754_s7 = inlined_call_operand.vmem [shape: f32[2,4,256], index: 7, kind: output, shape index: {}]  }
   0x1   :  { %12 = sst [smem:[#allocation2]] %s753_s6 }
   0x2 LB: > { %s579_s27 = sadd.s32 4294967295, %s646_s26   ;;  %p583_p0 = scmp.ge.s32.totalorder %s646_s26, 1  ;;  %s646_s26 = sphi %s695_s26, %s18_s26  }
   0x3   : > { %p238_p1 = scmp.lt.s32.totalorder %s646_s26, 3 }
   0x5   : > { %p239_p2 = pnand %p583_p0, %p238_p1 }
   0x6   : > { %p270_p3 = scmp.lt.s32.totalorder (!%p239_p2), %s579_s27, 1  ;;  %vm284_vm0 = vcmask (!%p239_p2), 1043456   ;;  %v648_v5 = vmov (!%p239_p2), 0.0   ;;  %vm649_vm1 = vmmov (!%p239_p2), 0   ;;  %v291_v8 = vld [vmem:[%s748_s1] sm:$0x3] (!%p239_p2)  ;;  %v466_v27 = vlaneseq (!%p239_p2) }
   0x7   : > { %242 = sbr.rel (%p239_p2) target bundleno = 760 (0x2f8), region = 48  ;;  %603 = vmatprep.subr.mxu0 (!%p239_p2), %v648_v5  ;;  %608 = vmatprep.subr.mxu1 (!%p239_p2), %v648_v5  ;;  %vm297_vm2 = vcmask (!%p239_p2), 31744   ;;  %v295_v9 = vld [vmem:[%s752_s5] sm:$0xf] (!%p239_p2)  ;;  %v650_v10 = vmov (!%p239_p2), 0   ;;  %vm379_vm3 = vcmask (!%p239_p2), 1041408  }
   0x8   : > { %605 = vmatprep.mubr.msk.f32.mxu0 (!%p239_p2), %vm649_vm1, %v648_v5  ;;  %610 = vmatprep.mubr.msk.f32.mxu1 (!%p239_p2), %vm649_vm1, %v648_v5  ;;  %v292_v11 = vld [vmem:[%s749_s2] sm:$0x3] (!%p239_p2)  ;;  %vm375_vm4 = vcmask (!%p239_p2), 15360   ;;  %v651_v25 = vmov (!%p239_p2), 839922192   ;;  %v467_v29 = vshrl.u32 (!%p239_p2), %v466_v27, 7 }
   0x9   : > { %625 = vset.pattern.permute.xlu0 (!%p239_p2), %v650_v10  ;;  %626 = vset.pattern.permute.xlu1 (!%p239_p2), %v650_v10  ;;  %v293_v16 = vld [vmem:[%s750_s3] sm:$0xf] (!%p239_p2)  ;;  %v464_v26 = vunpack.c.l.s4 (!%p239_p2), %v651_v25  ;;  %s296_s18 = sld [smem:[#allocation2]] (!%p239_p2) }
   0xa   : > { %v294_v17 = vld [vmem:[%s751_s4] sm:$0xf] (!%p239_p2) }
   0xb   : > { %v465_v28 = vunpack.c.0.s8 (!%p239_p2), %v464_v26 }
   0xd   : > { %v468_v30 = vsub.s32 (!%p239_p2), %v465_v28, %v467_v29 }
   0xe   : > { %s756_s27 = smov (!%p270_p3, %s579_s27), 1 }
   0xf   : > { %s597_s6 = sshll.u32 %s756_s27, 3  ;;  %v489_v48 = vstv %s296_s18 }
  0x10   : > { %s274_s30 = scalar_lea.vmem %s747_s0, %s597_s6  ;;  %s279_s21 = scalar_lea.vmem %s754_s7, %s597_s6 }
  0x11   : > { %v711_v0 = vld [vmem:[%s274_s30] sm:$0xff] }
  0x12   : > { %v282_v1 = vcombine.high %v711_v0, %v711_v0  ;;  %v285_v2 = vsel %vm284_vm0, %v711_v0, 0.0 }
  0x14   : > { %v286_v3 = vsel %vm284_vm0, %v282_v1, 0.0 }
  0x15   : > { %v287_v4 = vadd.f32 %v286_v3, %v285_v2 }
  0x17   : > { %288 = vadd.xlane.f32.xlu0 %v287_v4 }
  0x2d   : > { %461 = vperm.xlu0 %625, %v295_v9  }
  0xa4   : > { %v289_v6 = vpop.xlane.xlu0 %288 }
  0xa5   : > { %v290_v7 = vmul.f32 0.00390625, %v289_v6 }
  0xa7   : > { %604 = vmatpush3.msk.msra.mxu0 %vm284_vm0, %v290_v7 }
  0xa8   : > { %606 = vmatmul.mubr.msk.f32.vlgmr.msra.gmra.mrb[0].mxu0 %vm297_vm2, %v291_v8 }
  0xac   : > { %v462_v31 = vpop.permute.xlu0 %461 }
  0xad   : > { %v469_v32 = vrot.slane %v462_v31, %v468_v30 }
  0xaf   : > { %v471_v33 = vmul.f32 %v469_v32, %v711_v0 }
  0xb1   : > { %v473_v34 = vcombine.high %v471_v33, %v471_v33  ;;  %v475_v35 = vsel %vm284_vm0, %v471_v33, 0.0 }
  0xb2   : > { %v476_v37 = vrot.slane %v475_v35, 4 }
  0xb3   : > { %v482_v36 = vsel %vm284_vm0, %v473_v34, 0.0 }
  0xb4   : > { %v483_v38 = vrot.slane %v482_v36, 4  ;;  %v477_v39 = vadd.f32 %v476_v37, %v475_v35 }
  0xb6   : > { %v484_v40 = vadd.f32 %v483_v38, %v482_v36  ;;  %v478_v41 = vrot.slane %v477_v39, 2 }
  0xb8   : > { %v485_v42 = vrot.slane %v484_v40, 2  ;;  %v479_v43 = vadd.f32 %v478_v41, %v477_v39 }
  0xba   : > { %v486_v44 = vadd.f32 %v485_v42, %v484_v40  ;;  %v480_v45 = vrot.slane %v479_v43, 1 }
  0xbc   : > { %v487_v46 = vrot.slane %v486_v44, 1  ;;  %v481_v47 = vadd.f32 %v480_v45, %v479_v43 }
  0xbe   : > { %v488_v49 = vadd.f32 %v487_v46, %v486_v44  ;;  %v490_v50 = vadd.f32 %v489_v48, %v481_v47 }
  0xc0   : > { %v491_v51 = vadd.f32 %v489_v48, %v488_v49  ;;  %v593_v52 = vmul.f32 -1.442695, %v490_v50 }
  0xc2   : > { %v594_v53 = vmul.f32 -1.442695, %v491_v51 }
 0x17b   : > { %v370_v12 = vpop.f32.mrb[0].mxu0 }
 0x17c   : > { %v371_v13 = vadd.f32 %v370_v12, %v292_v11  ;;  %v607_v14 = vpop.f32.mrb[1].mxu0 }
 0x17e   : > { %v374_v15 = vmax.f32 %v371_v13, 0.0 }
 0x180   : > { %609 = vmatpush3.msk.msra.mxu1 %vm379_vm3, %v374_v15 }
 0x181   : > { %611 = vmatmul.mubr.msk.f32.vlgmr.msra.gmra.mrb[0].mxu1 %vm375_vm4, %v293_v16 }
 0x254   : > { %v449_v18 = vpop.f32.mrb[0].mxu1 }
 0x255   : > { %v450_v19 = vadd.f32 %v449_v18, %v294_v17  ;;  %v612_v20 = vpop.f32.mrb[1].mxu1 }
 0x257   : > { %v592_v21 = vmul.f32 -1.442695, %v450_v19 }
 0x259   : > { %628 = vpow2.f32 %v592_v21 }
 0x263   : > { %v629_v22 = vpop.eup %628 }
 0x264   : > { %v456_v23 = vadd.f32 1.0, %v629_v22 }
 0x266   : > { %630 = vrcp.f32 %v456_v23 }
 0x267   : > { %632 = vpow2.f32 %v593_v52 }
 0x268   : > { %634 = vpow2.f32 %v594_v53 }
 0x270   : > { %v631_v24 = vpop.eup %630 }
 0x271   : > { %506 = vperm.xlu1 %626, %v631_v24   ;;  %v633_v54 = vpop.eup %632 }
 0x272   : > { %v635_v55 = vpop.eup %634  ;;  %v498_v56 = vadd.f32 1.0, %v633_v54 }
 0x273   : > { %v499_v57 = vadd.f32 1.0, %v635_v55 }
 0x274   : > { %636 = vrcp.f32 %v498_v56 }
 0x275   : > { %638 = vrcp.f32 %v499_v57 }
 0x27e   : > { %v637_v58 = vpop.eup %636 }
 0x27f   : > { %v639_v59 = vpop.eup %638 }
 0x280   : > { %v519_v60 = vcombine.low %v637_v58, %v639_v59 }
 0x282   : > { %v521_v1 = vmul.f32 %v519_v60, %v711_v0 }
 0x2f0   : > { %v507_v61 = vpop.permute.xlu1 %506 }
 0x2f1   : > { %v514_v62 = vrot.slane %v507_v61, %v468_v30 }
 0x2f3   : > { %v516_v63 = vmul.f32 %v514_v62, %v711_v0 }
 0x2f5   : > { %v522_v2 = vmax.f32 %v516_v63, %v521_v1 }
 0x2f7   : > { %523 = vst [vmem:[%s279_s21] sm:$0xff] %v522_v2 }
 0x2f8 PF: > { %s18_s26 = sadd.s32 1, %s646_s26  }
 0x2f9   : > { %p15_p4 = scmp.ge.s32.totalorder %s18_s26, 4  }
 0x2fb   :  { %17 = sbr.rel (!%p15_p4) target bundleno = 2 (0x2), region = 78 }

</bundles_post_ra>
